<compile_context>
chip_gen: v5e
topology: v5e:2x2
jax: 0.10.0
libtpu: 0.0.40
codegen_flags: <defaults>
</compile_context>

<pallas_src>
import functools

import jax
import jax.numpy as jnp
from jax.experimental import pallas as pl
from jax.experimental.pallas import tpu as pltpu


def _rmsnorm_kernel_bias(x_ref, w_ref, b_ref, o_ref, *, epsilon):
    # f32 compute throughout; single downcast at the store. Bit-identical to
    # PyTorch for f32 inputs; for bf16 inputs this is slightly MORE accurate
    # than the module's .type_as(x)-before-affine ordering.
    x = x_ref[...].astype(jnp.float32)
    ms = jnp.mean(x * x, axis=-1, keepdims=True)      # x.pow(2).mean(-1, keepdim=True)
    normed = x * jax.lax.rsqrt(ms + epsilon)          # x * rsqrt(ms + eps)  (EUP)
    o_ref[...] = (normed * w_ref[...] + b_ref[...]).astype(o_ref.dtype)


def _rmsnorm_kernel_nobias(x_ref, w_ref, o_ref, *, epsilon):
    x = x_ref[...].astype(jnp.float32)
    ms = jnp.mean(x * x, axis=-1, keepdims=True)
    normed = x * jax.lax.rsqrt(ms + epsilon)
    o_ref[...] = (normed * w_ref[...]).astype(o_ref.dtype)


def _pick_row_block(rows, ndim, itemsize, target_block_bytes):
    """Choose the row tile so each (row_block, ndim) block is a few MiB."""
    # Sublane packing: 8 rows for 4-byte dtypes, 16 for 2-byte, 32 for 1-byte.
    packing = 8 * max(1, 4 // int(itemsize))
    row_bytes = max(1, ndim * int(itemsize))
    rb = (target_block_bytes // row_bytes) // packing * packing
    rb = max(packing, rb)
    # Keep >= 2 grid steps when there's enough work so the "parallel" grid
    # axis can be sharded across the 2 TensorCores of a v7x chip.
    if rows > packing:
        half_rows = (rows + 1) // 2
        half = ((half_rows + packing - 1) // packing) * packing
        rb = min(rb, half)
    # Never bigger than the (packing-rounded) total row count.
    rows_padded = ((rows + packing - 1) // packing) * packing
    rb = min(rb, rows_padded)
    return max(packing, rb)


def rms_layer_norm(x, weight, bias=None, epsilon=1e-5, *, row_block=None,
                   target_block_bytes=4 << 20):
    """RMSLayerNorm forward. Normalizes over the last axis of `x`.

    Matches `output = rmsnorm(x.float()).type_as(x); output * weight (+ bias)`
    with the affine performed in f32 and a single final downcast to x.dtype.
    """
    orig_shape = x.shape
    ndim = orig_shape[-1]
    assert weight.shape == (ndim,)

    x2d = x.reshape(-1, ndim)
    rows = x2d.shape[0]
    itemsize = jnp.dtype(x2d.dtype).itemsize

    if row_block is None:
        row_block = _pick_row_block(rows, ndim, itemsize, target_block_bytes)

    # Ragged last block: Pallas masks out-of-range output rows on the store;
    # each row's reduction is independent, so garbage in out-of-range input
    # rows never contaminates valid rows. No pad/slice pass over HBM needed.
    grid = (pl.cdiv(rows, row_block),)

    # Cast params to the f32 compute dtype once in the wrapper; the (1, ndim)
    # blocks stay VMEM-resident across the whole grid (constant index_map).
    w2d = weight.astype(jnp.float32).reshape(1, ndim)

    x_spec = pl.BlockSpec((row_block, ndim), lambda i: (i, 0))
    param_spec = pl.BlockSpec((1, ndim), lambda i: (0, 0))
    out_spec = pl.BlockSpec((row_block, ndim), lambda i: (i, 0))

    if bias is None:
        kernel = functools.partial(_rmsnorm_kernel_nobias, epsilon=epsilon)
        in_specs = [x_spec, param_spec]
        args = (x2d, w2d)
        n_params = 1
    else:
        assert bias.shape == (ndim,)
        kernel = functools.partial(_rmsnorm_kernel_bias, epsilon=epsilon)
        b2d = bias.astype(jnp.float32).reshape(1, ndim)
        in_specs = [x_spec, param_spec, param_spec]
        args = (x2d, w2d, b2d)
        n_params = 2

    # Explicit VMEM budget: double-buffered input + output blocks, resident
    # params, plus slack for f32 intermediates. Clamped to stay comfortably
    # inside v7x's 64 MiB physical VMEM while still allowing multi-MiB tiles.
    block_bytes = row_block * ndim * itemsize
    needed = (4 * block_bytes                      # 2x in + 2x out buffers
              + 2 * row_block * ndim * 4           # f32 intermediates headroom
              + n_params * ndim * 4
              + (2 << 20))
    vmem_limit = int(min(max(needed, 32 << 20), 48 << 20))

    out = pl.pallas_call(
        kernel,
        out_shape=jax.ShapeDtypeStruct((rows, ndim), x.dtype),
        grid_spec=pltpu.PrefetchScalarGridSpec(
            num_scalar_prefetch=0,
            grid=grid,
            in_specs=in_specs,
            out_specs=out_spec,
        ),
        compiler_params=pltpu.CompilerParams(
            dimension_semantics=("parallel",),
            vmem_limit_bytes=vmem_limit,
        ),
    )(*args)

    return out.reshape(orig_shape)


def _reference(x, weight, bias, epsilon):
    xf = x.astype(jnp.float32)
    normed = xf * jax.lax.rsqrt(jnp.mean(xf * xf, axis=-1, keepdims=True) + epsilon)
    out = normed * weight.astype(jnp.float32)
    if bias is not None:
        out = out + bias.astype(jnp.float32)
    return out.astype(x.dtype)


if __name__ == "__main__":
    key = jax.random.PRNGKey(0)
    k1, k2, k3 = jax.random.split(key, 3)

    # Case 1: bias=True (module default init: weight=ones, bias=zeros).
    batch, seq, hidden = 2, 8, 32
    x1 = jax.random.normal(k1, (batch, seq, hidden), dtype=jnp.float32)
    weight1 = jnp.ones((hidden,), dtype=jnp.float32)
    bias1 = jnp.zeros((hidden,), dtype=jnp.float32)
    out1 = jax.block_until_ready(rms_layer_norm(x1, weight1, bias1, epsilon=1e-5))
    ref1 = _reference(x1, weight1, bias1, 1e-5)
    assert jnp.allclose(out1, ref1, atol=1e-5, rtol=1e-5), "mismatch (bias path)"

    # Case 2: bias=False, ragged row count (exercises the masked last block)
    # and a lane-dense hidden size with a non-trivial weight.
    hidden2 = 128
    x2 = jax.random.normal(k2, (3, 5, hidden2), dtype=jnp.float32)
    weight2 = 1.0 + 0.1 * jax.random.normal(k3, (hidden2,), dtype=jnp.float32)
    out2 = jax.block_until_ready(rms_layer_norm(x2, weight2, None, epsilon=1e-5))
    ref2 = _reference(x2, weight2, None, 1e-5)
    assert jnp.allclose(out2, ref2, atol=1e-5, rtol=1e-5), "mismatch (no-bias path)"

    print("KERNEL_OK")
</pallas_src>

<mosaic_0001>
module attributes {stable_mosaic.version = 11 : i64} {
  func.func @_rmsnorm_kernel_bias(%arg0: i32, %arg1: memref<8x32xf32, #tpu.memory_space<vmem>>, %arg2: memref<1x32xf32, #tpu.memory_space<vmem>>, %arg3: memref<1x32xf32, #tpu.memory_space<vmem>>, %arg4: memref<8x32xf32, #tpu.memory_space<vmem>>) attributes {dimension_semantics = [#tpu.dimension_semantics<parallel>], iteration_bounds = array<i64: 2>, scalar_prefetch = 0 : i64, scratch_operands = 0 : i64, tpu.core_type = #tpu.core_type<tc>, window_params = [{transform_indices = @transform_0, window_bounds = array<i64: 8, 32>}, {pipeline_mode = #tpu.pipeline_mode<synchronous>, transform_indices = @transform_1, window_bounds = array<i64: 1, 32>}, {pipeline_mode = #tpu.pipeline_mode<synchronous>, transform_indices = @transform_2, window_bounds = array<i64: 1, 32>}, {transform_indices = @transform_3, window_bounds = array<i64: 8, 32>}]} {
    %c0 = arith.constant 0 : index
    %c0_0 = arith.constant 0 : index
    %0 = vector.load %arg1[%c0, %c0_0] : memref<8x32xf32, #tpu.memory_space<vmem>>, vector<8x32xf32>
    %1 = arith.mulf %0, %0 : vector<8x32xf32>
    %cst = arith.constant dense<0.000000e+00> : vector<8xf32>
    %2 = vector.multi_reduction <add>, %1, %cst [1] : vector<8x32xf32> to vector<8xf32>
    %3 = vector.shape_cast %2 : vector<8xf32> to vector<8x1xf32>
    %cst_1 = arith.constant 3.200000e+01 : f32
    %4 = vector.broadcast %cst_1 : f32 to vector<8x1xf32>
    %5 = arith.divf %3, %4 : vector<8x1xf32>
    %cst_2 = arith.constant 9.99999974E-6 : f32
    %6 = vector.broadcast %cst_2 : f32 to vector<8x1xf32>
    %7 = arith.addf %5, %6 : vector<8x1xf32>
    %8 = math.rsqrt %7 : vector<8x1xf32>
    %9 = vector.broadcast %8 : vector<8x1xf32> to vector<8x32xf32>
    %10 = arith.mulf %0, %9 : vector<8x32xf32>
    %c0_3 = arith.constant 0 : index
    %c0_4 = arith.constant 0 : index
    %11 = vector.load %arg2[%c0_3, %c0_4] : memref<1x32xf32, #tpu.memory_space<vmem>>, vector<1x32xf32>
    %12 = vector.broadcast %11 : vector<1x32xf32> to vector<8x32xf32>
    %13 = arith.mulf %10, %12 : vector<8x32xf32>
    %c0_5 = arith.constant 0 : index
    %c0_6 = arith.constant 0 : index
    %14 = vector.load %arg3[%c0_5, %c0_6] : memref<1x32xf32, #tpu.memory_space<vmem>>, vector<1x32xf32>
    %15 = vector.broadcast %14 : vector<1x32xf32> to vector<8x32xf32>
    %16 = arith.addf %13, %15 : vector<8x32xf32>
    %c0_7 = arith.constant 0 : index
    %c0_8 = arith.constant 0 : index
    %17 = vector.load %arg4[%c0_7, %c0_8] : memref<8x32xf32, #tpu.memory_space<vmem>>, vector<8x32xf32>
    tpu.vector_store %arg4[%c0_7, %c0_8], %16 {strides = array<i32>} : memref<8x32xf32, #tpu.memory_space<vmem>>, vector<8x32xf32>,
    return
  }
  func.func @transform_0(%arg0: i32) -> (i32, i32) {
    %c0_i32 = arith.constant 0 : i32
    %c0_i32_0 = arith.constant 0 : i32
    return %arg0, %c0_i32 : i32, i32
  }
  func.func @transform_1(%arg0: i32) -> (i32, i32) {
    %c0_i32 = arith.constant 0 : i32
    %c0_i32_0 = arith.constant 0 : i32
    %c0_i32_1 = arith.constant 0 : i32
    return %c0_i32, %c0_i32_0 : i32, i32
  }
  func.func @transform_2(%arg0: i32) -> (i32, i32) {
    %c0_i32 = arith.constant 0 : i32
    %c0_i32_0 = arith.constant 0 : i32
    %c0_i32_1 = arith.constant 0 : i32
    return %c0_i32, %c0_i32_0 : i32, i32
  }
  func.func @transform_3(%arg0: i32) -> (i32, i32) {
    %c0_i32 = arith.constant 0 : i32
    %c0_i32_0 = arith.constant 0 : i32
    return %arg0, %c0_i32 : i32, i32
  }
}

</mosaic_0001>

<bundles_post_ra>
// kernel: tpu_custom_call.1
= control target key start
LH: loop header
LB: loop body
LE: loop exit
PB: predicated region body
PF: predicated region fallthrough
CT: control target
= control target key end

     0   :  { %8 = vsyncpa [#allocation3], 0  ;;  %s715_s0 = inlined_call_operand.hbm [shape: f32[16,32], index: 0, kind: input, shape index: {}]   ;;  %s716_s1 = inlined_call_operand.hbm [shape: f32[1,32], index: 1, kind: input, shape index: {}]   ;;  %s717_s2 = inlined_call_operand.vmem [shape: f32[1,32], index: 2, kind: input, shape index: {}]   ;;  %s718_s3 = inlined_call_operand.hbm [shape: f32[16,32], index: 3, kind: output, shape index: {}]  }
   0x1   :  { %10 = vsyncpa [#allocation3 + $0x1], 0 }
   0x2   :  { %11 = vsyncpa [#allocation6], 0 }
   0x3   :  { %12 = vsyncpa [#allocation4], 0 }
   0x4   :  { %14 = vsyncpa [#allocation4 + $0x1], 0  ;;  %s568_s12 = smov 0   ;;  %s570_s13 = smov 0  }
   0x5   :  { %s572_s14 = smov 0   ;;  %s574_s15 = smov 0  }
   0x6 LB: > { %s589_s16 = sadd.s32 4294967295, %s544_s15   ;;  %s336_s17 = sadd.s32 4294967294, %s544_s15   ;;  %s544_s15 = sphi %s574_s15, %s728_s15   ;;  %s540_s14 = sphi %s572_s14, %s727_s14   ;;  %s536_s13 = sphi %s570_s13, %s726_s13   ;;  %s532_s12 = sphi %s568_s12, %s725_s12  }
   0x7   : > { %p40_p0 = scmp.ne.s32.totalorder %s536_s13, %s532_s12  ;;  %p41_p1 = scmp.eq.s32.totalorder %s589_s16, 0 }
   0x8   : > { %p106_p2 = scmp.eq.s32.totalorder %s589_s16, 1  ;;  %p112_p3 = scmp.eq.s32.totalorder %s336_s17, 1 }
   0x9   : > { %p598_p4 = por %p41_p1, %p40_p0  ;;  %p337_p5 = scmp.ge.s32.totalorder %s544_s15, 1 }
   0xa   : > { %p603_p6 = por %p112_p3, %p40_p0  ;;  %p119_p7 = scmp.lt.s32.totalorder %s544_s15, 3 }
   0xb   : > { %s131_s22 = sshll.u32 %s716_s1, 4  ;;  %s546_s24 = smov [#allocation5]   ;;  %s132_s22 = int_to_ptr.hbm [resolvable:$true] %s131_s22 }
   0xc   : > { %p611_p8 = pnand %p337_p5, %p119_p7  ;;  %s133_s25 = sshll.u32 %s546_s24, 4  ;;  %s134_s25 = int_to_ptr.vmem [resolvable:$true] %s133_s25 }
   0xd   : > { %s621_s26 = sadd.s32 1, %s544_s15   ;;  %s27_s27 = sadd.s32 1, %s540_s14 }
   0xe   : > { %p358_p10 = pneg %p611_p8  ;;  %s24_s28 = ssub.s32 %s544_s15, %s621_s26 }
   0xf   : > { %p25_p12 = scmp.eq.s32.totalorder %s24_s28, 0  ;;  %p34_p13 = scmp.ne.s32.totalorder %s540_s14, %s536_s13 }
  0x10   : > { %p359_p11 = pnand %p358_p10, %p41_p1  ;;  %p35_p0 = scmp.eq.s32.totalorder %s544_s15, 0 }
  0x11   : > { %s630_s29 = scalar_select %p25_p12, %s540_s14, %s27_s27  }
  0x12   : > { %361 = dma.hbm_to_vmem [thread:$0]  (!%p359_p11), %s132_s22, 16, %s134_s25, [#allocation6]  }
  0x13   : > { %p634_p3 = por %p106_p2, %p34_p13  ;;  %p371_p5 = scmp.lt.s32.totalorder %s544_s15, 2 }
  0x14   : > { %s147_s4 = sand.u32 1, %s540_s14   ;;  %s341_s5 = sshll.u32 %s544_s15, 3 }
  0x15   : > { %p36_p7 = por %p35_p0, %p34_p13  ;;  %s340_s6 = sshll.u32 %s147_s4, 3 }
  0x16   : > { %s155_s9 = scalar_lea.hbm %s715_s0, %s341_s5  ;;  %s151_s11 = scalar_lea.vmem [#allocation2], %s340_s6 }
  0x17   : > { %s157_s10 = sshll.u32 %s155_s9, 4  ;;  %s159_s17 = sshll.u32 %s151_s11, 4  ;;  %s158_s10 = int_to_ptr.hbm [resolvable:$true] %s157_s10  ;;  %s160_s17 = int_to_ptr.vmem [resolvable:$true] %s159_s17 }
  0x18   : > { %p644_p10 = pnand %p371_p5, %p36_p7  ;;  %s148_s21 = scalar_lea.sflag [#allocation3], %s147_s4 }
  0x19   : > { %s444_s22 = sshra.s32 %s158_s10, 4  ;;  %s451_s28 = scalar_lea.hbm %s715_s0, 16  ;;  %s445_s22 = int_to_ptr.hbm [resolvable:$true] %s444_s22 }
  0x1a   : > { %s446_s24 = scalar_lea.hbm %s445_s22, 8  ;;  %p448_p11 = pneg %p644_p10 }
  0x1b   : > { %p447_p2 = scmp.ne.s32.totalorder %s445_s22, %s446_s24  ;;  %p452_p0 = scmp.lt.s32.totalorder %s445_s22, %s715_s0 }
  0x1c   : > { %p453_p5 = scmp.lt.s32.totalorder %s451_s28, %s446_s24 }
  0x1d   : > { %p449_p12 = pnand %p448_p11, %p447_p2 }
  0x1e   : > { %p454_p7 = por %p453_p5, %p452_p0 }
  0x1f   : > { %p450_p13 = pneg %p449_p12 }
  0x21   : > { %p455_p9 = pnand %p454_p7, %p450_p13 }
  0x23   : > { %458 = shalt.err (!%p455_p9)
}
  0x24   : > { %365 = dma.hbm_to_vmem [thread:$0]  (!%p644_p10), %s158_s10, 128, %s160_s17, %s148_s21  }
  0x25   : > { %168 = sbr.rel (%p611_p8) target bundleno = 196 (0xc4), region = 32  ;;  %s661_s4 = sand.u32 (!%p611_p8), 1, %s536_s13  }
  0x26   : > { %s343_s7 = sshll.u32 (!%p611_p8), %s661_s4, 3  ;;  %s171_s8 = scalar_lea.sflag (!%p611_p8), [#allocation3], %s661_s4 }
  0x27   : > { %s174_s9 = scalar_lea.vmem (!%p611_p8), [#allocation2], %s343_s7 }
  0x2a   : > { %519 = dma.done.wait (%p598_p4), %s171_s8, 128  }
  0x2b   : > { %521 = vsyncadd (%p598_p4), %s171_s8, 4294967168 }
  0x2c   : > { %523 = dma.done.wait (%p41_p1), [#allocation6], 16  }
  0x2d   : > { %525 = vsyncadd (%p41_p1), [#allocation6], 4294967280  ;;  %v203_v0 = vld [vmem:[%s174_s9] sm:$0xff]  ;;  %vm205_vm0 = vcmask 261120   ;;  %v547_v3 = vmov 32.0   ;;  %s347_s18 = sshll.u32 %s589_s16, 3 }
  0x2e   : > { %v204_v1 = vmul.f32 %v203_v0, %v203_v0  ;;  %410 = vrcp.f32 %v547_v3  ;;  %v408_v19 = vld [vmem:[#allocation5] ss:$0 sm:$0xff]  ;;  %s251_s11 = scalar_lea.hbm %s718_s3, %s347_s18  ;;  %v409_v22 = vld [vmem:[%s717_s2] ss:$0 sm:$0xff]  ;;  %s202_s21 = scalar_lea.vmem [#allocation7], %s343_s7 }
  0x2f   : > { %s253_s22 = sshll.u32 %s202_s21, 4  ;;  %s255_s16 = sshll.u32 %s251_s11, 4  ;;  %s254_s22 = int_to_ptr.vmem [resolvable:$true] %s253_s22  ;;  %s256_s16 = int_to_ptr.hbm [resolvable:$true] %s255_s16 }
  0x30   : > { %v206_v2 = vsel %vm205_vm0, %v204_v1, 0.0  ;;  %s241_s24 = scalar_lea.sflag [#allocation4], %s661_s4  ;;  %s488_s25 = sshra.s32 %s256_s16, 4  ;;  %s489_s25 = int_to_ptr.hbm [resolvable:$true] %s488_s25 }
  0x31   : > { %207 = vadd.xlane.f32.xlu0 %v206_v2  ;;  %s490_s27 = scalar_lea.hbm %s489_s25, 8  ;;  %s494_s6 = scalar_lea.hbm %s718_s3, 16 }
  0x32   : > { %p491_p1 = scmp.ne.s32.totalorder %s489_s25, %s490_s27  ;;  %p495_p9 = scmp.lt.s32.totalorder %s489_s25, %s718_s3 }
  0x33   : > { %p496_p10 = scmp.lt.s32.totalorder %s494_s6, %s490_s27 }
  0x34   : > { %v411_v4 = vpop.eup %410  ;;  %p492_p4 = pnand %p491_p1, %p634_p3 }
  0x35   : > { %v210_v5 = vmul.f32 32.0, %v411_v4  ;;  %vm214_vm1 = vweird.f32 %v411_v4  ;;  %p497_p2 = por %p496_p10, %p495_p9 }
  0x36   : > { %p493_p8 = pneg %p492_p4 }
  0x37   : > { %v211_v6 = vsub.f32 1.0, %v210_v5 }
  0x38   : > { %p498_p11 = pnand %p497_p2, %p493_p8 }
  0x39   : > { %v212_v7 = vmul.f32 %v411_v4, %v211_v6 }
  0x3b   : > { %v213_v8 = vadd.f32 %v411_v4, %v212_v7 }
  0x3d   : > { %v215_v9 = vsel %vm214_vm1, %v411_v4, %v213_v8 }
  0xa4   : > { %v208_v10 = vpop.xlane.xlu0 %207 }
  0xa5   : > { %v216_v11 = vmul.f32 %v215_v9, %v208_v10 }
  0xa7   : > { %v217_v12 = vadd.f32 1e-05, %v216_v11 }
  0xa9   : > { %412 = vrsqrt.f32 %v217_v12  ;;  %vm224_vm3 = vweird.f32 %v217_v12 }
  0xaf   : > { %v413_v13 = vpop.eup %412 }
  0xb0   : > { %v219_v14 = vmul.f32 %v413_v13, %v217_v12  ;;  %vm225_vm2 = vweird.f32 %v413_v13 }
  0xb1   : > { %vm226_vm4 = vmor %vm224_vm3, %vm225_vm2 }
  0xb2   : > { %v220_v15 = vmul.f32 %v413_v13, %v219_v14 }
  0xb4   : > { %v221_v16 = vmul.f32 0.5, %v220_v15 }
  0xb6   : > { %v222_v17 = vsub.f32 1.5, %v221_v16 }
  0xb8   : > { %v223_v18 = vmul.f32 %v413_v13, %v222_v17 }
  0xba   : > { %v227_v20 = vsel %vm226_vm4, %v413_v13, %v223_v18 }
  0xbb   : > { %v228_v21 = vmul.f32 %v227_v20, %v203_v0 }
  0xbd   : > { %v233_v23 = vmul.f32 %v408_v19, %v228_v21 }
  0xbf   : > { %v238_v24 = vadd.f32 %v409_v22, %v233_v23 }
  0xc1   : > { %239 = vst.msk [vmem:[%s202_s21] sm:$0xff] %vm205_vm0, %v238_v24 }
  0xc2   : > { %501 = shalt.err (!%p498_p11)
}
  0xc3   : > { %356 = dma.vmem_to_hbm [thread:$0]  (%p634_p3), %s254_s22, 128, %s256_s16, %s241_s24  }
  0xc4 PF: > { %s267_s4 = sand.u32 1, %s532_s12   ;;  %p724_p12 = scmp.ge.s32.totalorder %s544_s15, 2 }
  0xc5   : > { %s268_s9 = scalar_lea.sflag [#allocation4], %s267_s4 }
  0xc6   : > { %p367_p13 = pnand %p724_p12, %p603_p6 }
  0xc8   : > { %p368_p0 = pneg %p367_p13 }
  0xca   : > { %527 = dma.done.wait (%p368_p0), %s268_s9, 128  }
  0xcb   : > { %529 = vsyncadd (%p368_p0), %s268_s9, 4294967168  ;;  %p17_p5 = scmp.ge.s32.totalorder %s621_s26, 4   ;;  %s725_s12 = smov %s536_s13 }
  0xcc   : > { %s726_s13 = smov %s540_s14  ;;  %s727_s14 = smov %s630_s29 }
  0xcd   : > { %s728_s15 = smov %s621_s26  ;;  %19 = sbr.rel (!%p17_p5) target bundleno = 6 (0x6), region = 81 }
  0xd2   :  { %274 = vsyncpa [#allocation3], 1 }
  0xd3   :  { %276 = vsyncpa [#allocation3 + $0x1], 1 }
  0xd4   :  { %277 = vsyncpa [#allocation6], 1 }
  0xd5   :  { %278 = vsyncpa [#allocation4], 1 }
  0xd6   :  { %280 = vsyncpa [#allocation4 + $0x1], 1 }

</bundles_post_ra>
